<compile_context>
chip_gen: v7x
topology: tpu7x:2x2x1
jax: 0.10.0
libtpu: 0.0.40
codegen_flags: <defaults>
</compile_context>

<pallas_src>
import jax
import jax.numpy as jnp
from jax.experimental import pallas as pl
from jax.experimental.pallas import tpu as pltpu

FEATURE_SIZE = 8
HIDDEN_SIZE = [32, 16]


def mlp_kernel(xT_ref, w01t_ref, b01_ref, w2t_ref, b2_ref, o_ref):
    # xT_ref:  (F, bt)    batch on lanes (f32 or bf16)
    # w01t:    (H1, F)    fused (layer0 @ layers[0]) weight, transposed
    # b01:     (H1, 1)    fused bias, column vector (f32, broadcast over lanes)
    # w2t:     (1, H1)    final linear weight, transposed
    # b2:      (1, 1)     final bias (f32)
    # o_ref:   (1, bt)    lane-dense output block (f32)
    wdt = w01t_ref.dtype
    x = xT_ref[...].astype(wdt)

    # Fused layer0 + layers[0] (+ ReLU):  h = relu(W01^T @ x^T + b01)
    h = jnp.dot(w01t_ref[...], x, preferred_element_type=jnp.float32)
    h = jnp.maximum(h + b01_ref[...], 0.0)               # (H1, bt) f32

    # Final linear:  out = w2^T @ h + b2   -> lane-dense (1, bt)
    out = jnp.dot(w2t_ref[...], h.astype(wdt),
                  preferred_element_type=jnp.float32)
    o_ref[...] = (out + b2_ref[...]).astype(o_ref.dtype)


def _fuse_params(params, compute_dtype):
    """Fuse layer0 (no activation) into layers[0] and transpose for the
    batch-on-lanes layout.  params are (w0,b0,w1,b1,w2,b2) with weights stored
    as (in_features, out_features).  Matmul operands are cast to
    `compute_dtype` (bf16 by default); biases stay f32 (added post-dot)."""
    w0, b0, w1, b1, w2, b2 = params
    w01 = (w0 @ w1).astype(jnp.float32)                 # (F, H1)
    b01 = (b0 @ w1 + b1).astype(jnp.float32)            # (1, H1)
    w01t = jnp.asarray(w01.T, compute_dtype)            # (H1, F)
    b01c = jnp.asarray(b01.T, jnp.float32)              # (H1, 1)
    w2t = jnp.asarray(w2.T, compute_dtype)              # (1, H1)
    b2v = jnp.asarray(b2.reshape(1, 1), jnp.float32)    # (1, 1)
    return w01t, b01c, w2t, b2v


def _choose_batch_tile(B, batch_tile):
    """Pick a lane-axis batch tile: large (default target 64K, capped at 128K
    so double-buffered f32 x tiles fit v5e's 16 MiB scoped-VMEM default),
    multiple of 128, and small enough that the parallel grid has >= 2 steps
    (so v7x's second TensorCore gets work)."""
    b128 = pl.cdiv(B, 128) * 128
    target = batch_tile if batch_tile is not None else 65536
    target = max(128, min(int(target), 131072))
    bt = min(target, b128)
    if b128 >= 256:
        half = ((b128 // 2) // 128) * 128
        bt = min(bt, max(half, 128))
    bt = max(128, (bt // 128) * 128)
    return bt


def mlp_forward(x, params, *, batch_tile=None, use_bf16=True,
                stream_bf16=False):
    """x: (B, feature_size) float32.  Returns (B, 1) float32.

    use_bf16:    run the two MXU dots in bf16 (f32 accumulation).
    stream_bf16: also store/stream x through HBM as bf16 (halves the dominant
                 HBM read term; further accuracy tradeoff)."""
    B, F = x.shape
    compute_dtype = jnp.bfloat16 if use_bf16 else jnp.float32
    stream_dtype = jnp.bfloat16 if (use_bf16 and stream_bf16) else jnp.float32

    w01t, b01c, w2t, b2v = _fuse_params(params, compute_dtype)
    H1 = w01t.shape[0]
    assert w01t.shape == (H1, F)

    bt = _choose_batch_tile(B, batch_tile)
    B_pad = pl.cdiv(B, bt) * bt

    # Lane-dense input layout: (F, B_pad), batch on lanes.  Pad (rows) first,
    # then transpose: XLA fuses the pad into the transpose copy so x only
    # takes one extra HBM pass in the wrapper.
    x_s = jnp.asarray(x, stream_dtype)
    if B_pad != B:
        x_s = jnp.pad(x_s, ((0, B_pad - B), (0, 0)))
    xT = x_s.T                                           # (F, B_pad)

    grid = (B_pad // bt,)

    in_specs = [
        pl.BlockSpec((F, bt), lambda i: (0, i)),         # x^T, tiled over batch
        pl.BlockSpec(w01t.shape, lambda i: (0, 0)),      # resident weights
        pl.BlockSpec(b01c.shape, lambda i: (0, 0)),
        pl.BlockSpec(w2t.shape, lambda i: (0, 0)),
        pl.BlockSpec(b2v.shape, lambda i: (0, 0)),
    ]
    out_specs = pl.BlockSpec((1, bt), lambda i: (0, i))  # lane-dense output

    outT = pl.pallas_call(
        mlp_kernel,
        out_shape=jax.ShapeDtypeStruct((1, B_pad), jnp.float32),
        grid_spec=pltpu.PrefetchScalarGridSpec(
            num_scalar_prefetch=0,
            grid=grid,
            in_specs=in_specs,
            out_specs=out_specs,
        ),
        compiler_params=pltpu.CompilerParams(
            dimension_semantics=("parallel",),
        ),
    )(xT, w01t, b01c, w2t, b2v)

    # (1, B_pad) -> (B, 1).  NOTE: padded tail columns hold relu(b01)@w2 + b2
    # garbage and must never be consumed; they are sliced off here.
    return outT[0, :B][:, None]


def init_params(key, feature_size=FEATURE_SIZE, hidden_size=HIDDEN_SIZE):
    """Deterministic init mimicking nn.Linear's uniform(-1/sqrt(fan_in), ...).
    Weights stored transposed: (in_features, out_features)."""
    dims = [feature_size] + list(hidden_size) + [1]
    keys = jax.random.split(key, 2 * (len(dims) - 1))
    params = []
    for li in range(len(dims) - 1):
        fan_in, fan_out = dims[li], dims[li + 1]
        bound = 1.0 / jnp.sqrt(jnp.float32(fan_in))
        w = jax.random.uniform(keys[2 * li], (fan_in, fan_out),
                               minval=-bound, maxval=bound, dtype=jnp.float32)
        b = jax.random.uniform(keys[2 * li + 1], (1, fan_out),
                               minval=-bound, maxval=bound, dtype=jnp.float32)
        params += [w, b]
    return tuple(params)


def mlp_reference(x, params):
    w0, b0, w1, b1, w2, b2 = params
    h0 = x @ w0 + b0                       # layer0, no activation
    h1 = jnp.maximum(h0 @ w1 + b1, 0.0)    # Linear + ReLU
    return h1 @ w2 + b2                    # final linear


if __name__ == "__main__":
    key = jax.random.PRNGKey(0)
    k_param, k_x = jax.random.split(key)

    params = init_params(k_param)

    batch = 512
    x = jax.random.normal(k_x, (batch, FEATURE_SIZE), dtype=jnp.float32)

    # Default tile selection: bt = 256 here (>= 2 parallel grid steps); at
    # large B it grows to 64K lanes per step.
    out = mlp_forward(x, params)
    out = jax.block_until_ready(out)

    ref = mlp_reference(x, params)
    assert out.shape == (batch, 1), out.shape
    # Fused W0@W1 plus bf16 matmul operands (f32 accumulation) differ from the
    # layer-by-layer f32 reference only by rounding.
    err = jnp.max(jnp.abs(out - ref))
    assert jnp.allclose(out, ref, atol=3e-2, rtol=3e-2), f"max err {err}"

    print("KERNEL_OK")
</pallas_src>

<mosaic_0001>
module attributes {stable_mosaic.version = 11 : i64} {
  func.func @mlp_kernel(%arg0: i32, %arg1: memref<8x256xf32, #tpu.memory_space<vmem>>, %arg2: memref<16x8xbf16, #tpu.memory_space<vmem>>, %arg3: memref<16x1xf32, #tpu.memory_space<vmem>>, %arg4: memref<1x16xbf16, #tpu.memory_space<vmem>>, %arg5: memref<1x1xf32, #tpu.memory_space<vmem>>, %arg6: memref<1x256xf32, #tpu.memory_space<vmem>>) attributes {dimension_semantics = [#tpu.dimension_semantics<parallel>], iteration_bounds = array<i64: 2>, scalar_prefetch = 0 : i64, scratch_operands = 0 : i64, tpu.core_type = #tpu.core_type<tc>, window_params = [{transform_indices = @transform_0, window_bounds = array<i64: 8, 256>}, {pipeline_mode = #tpu.pipeline_mode<synchronous>, transform_indices = @transform_1, window_bounds = array<i64: 16, 8>}, {pipeline_mode = #tpu.pipeline_mode<synchronous>, transform_indices = @transform_2, window_bounds = array<i64: 16, 1>}, {pipeline_mode = #tpu.pipeline_mode<synchronous>, transform_indices = @transform_3, window_bounds = array<i64: 1, 16>}, {pipeline_mode = #tpu.pipeline_mode<synchronous>, transform_indices = @transform_4, window_bounds = array<i64: 1, 1>}, {transform_indices = @transform_5, window_bounds = array<i64: 1, 256>}]} {
    %c0 = arith.constant 0 : index
    %c0_0 = arith.constant 0 : index
    %0 = vector.load %arg1[%c0, %c0_0] : memref<8x256xf32, #tpu.memory_space<vmem>>, vector<8x256xf32>
    %1 = arith.truncf %0 : vector<8x256xf32> to vector<8x256xbf16>
    %c0_1 = arith.constant 0 : index
    %c0_2 = arith.constant 0 : index
    %2 = vector.load %arg2[%c0_1, %c0_2] : memref<16x8xbf16, #tpu.memory_space<vmem>>, vector<16x8xbf16>
    %cst = arith.constant dense<0.000000e+00> : vector<16x256xf32>
    %3 = tpu.matmul %2, %1, %cst {dimension_numbers = #tpu.dot_dimension_numbers<[1], [0], [0], [1], [0, 0, 1, 1], [], []>} : vector<16x8xbf16>, vector<8x256xbf16>, vector<16x256xf32> -> vector<16x256xf32>
    %c0_3 = arith.constant 0 : index
    %c0_4 = arith.constant 0 : index
    %4 = vector.load %arg3[%c0_3, %c0_4] : memref<16x1xf32, #tpu.memory_space<vmem>>, vector<16x1xf32>
    %5 = vector.broadcast %4 : vector<16x1xf32> to vector<16x256xf32>
    %6 = arith.addf %3, %5 : vector<16x256xf32>
    %cst_5 = arith.constant 0.000000e+00 : f32
    %7 = vector.broadcast %cst_5 : f32 to vector<16x256xf32>
    %8 = arith.maximumf %6, %7 : vector<16x256xf32>
    %c0_6 = arith.constant 0 : index
    %c0_7 = arith.constant 0 : index
    %9 = vector.load %arg4[%c0_6, %c0_7] : memref<1x16xbf16, #tpu.memory_space<vmem>>, vector<1x16xbf16>
    %10 = arith.truncf %8 : vector<16x256xf32> to vector<16x256xbf16>
    %cst_8 = arith.constant dense<0.000000e+00> : vector<1x256xf32>
    %11 = tpu.matmul %9, %10, %cst_8 {dimension_numbers = #tpu.dot_dimension_numbers<[1], [0], [0], [1], [0, 0, 1, 1], [], []>} : vector<1x16xbf16>, vector<16x256xbf16>, vector<1x256xf32> -> vector<1x256xf32>
    %c0_9 = arith.constant 0 : index
    %c0_10 = arith.constant 0 : index
    %12 = vector.load %arg5[%c0_9, %c0_10] : memref<1x1xf32, #tpu.memory_space<vmem>>, vector<1x1xf32>
    %13 = vector.broadcast %12 : vector<1x1xf32> to vector<1x256xf32>
    %14 = arith.addf %11, %13 : vector<1x256xf32>
    %c0_11 = arith.constant 0 : index
    %c0_12 = arith.constant 0 : index
    %15 = vector.load %arg6[%c0_11, %c0_12] : memref<1x256xf32, #tpu.memory_space<vmem>>, vector<1x256xf32>
    tpu.vector_store %arg6[%c0_11, %c0_12], %14 {strides = array<i32>} : memref<1x256xf32, #tpu.memory_space<vmem>>, vector<1x256xf32>,
    return
  }
  func.func @transform_0(%arg0: i32) -> (i32, i32) {
    %c0_i32 = arith.constant 0 : i32
    %c0_i32_0 = arith.constant 0 : i32
    return %c0_i32, %arg0 : i32, i32
  }
  func.func @transform_1(%arg0: i32) -> (i32, i32) {
    %c0_i32 = arith.constant 0 : i32
    %c0_i32_0 = arith.constant 0 : i32
    %c0_i32_1 = arith.constant 0 : i32
    return %c0_i32, %c0_i32_0 : i32, i32
  }
  func.func @transform_2(%arg0: i32) -> (i32, i32) {
    %c0_i32 = arith.constant 0 : i32
    %c0_i32_0 = arith.constant 0 : i32
    %c0_i32_1 = arith.constant 0 : i32
    return %c0_i32, %c0_i32_0 : i32, i32
  }
  func.func @transform_3(%arg0: i32) -> (i32, i32) {
    %c0_i32 = arith.constant 0 : i32
    %c0_i32_0 = arith.constant 0 : i32
    %c0_i32_1 = arith.constant 0 : i32
    return %c0_i32, %c0_i32_0 : i32, i32
  }
  func.func @transform_4(%arg0: i32) -> (i32, i32) {
    %c0_i32 = arith.constant 0 : i32
    %c0_i32_0 = arith.constant 0 : i32
    %c0_i32_1 = arith.constant 0 : i32
    return %c0_i32, %c0_i32_0 : i32, i32
  }
  func.func @transform_5(%arg0: i32) -> (i32, i32) {
    %c0_i32 = arith.constant 0 : i32
    %c0_i32_0 = arith.constant 0 : i32
    return %c0_i32, %arg0 : i32, i32
  }
}

</mosaic_0001>

<bundles_post_ra>
// kernel: tpu_custom_call.1
= control target key start
LH: loop header
LB: loop body
LE: loop exit
PB: predicated region body
PF: predicated region fallthrough
CT: control target
= control target key end

     0   :  { %s737_s0 = inlined_call_operand.vmem [shape: f32[8,512], index: 0, kind: input, shape index: {}]   ;;  %s738_s1 = inlined_call_operand.vmem [shape: bf16[16,8], index: 1, kind: input, shape index: {}]   ;;  %s739_s2 = inlined_call_operand.vmem [shape: f32[16,1], index: 2, kind: input, shape index: {}]   ;;  %s740_s3 = inlined_call_operand.vmem [shape: bf16[1,16], index: 3, kind: input, shape index: {}]   ;;  %s741_s4 = inlined_call_operand.<no memory space> [shape: f32[1,1], index: 4, kind: input, shape index: {}]   ;;  %s742_s5 = inlined_call_operand.hbm [shape: f32[1,512], index: 5, kind: output, shape index: {}]  }
   0x1   :  { %v10_v0 = vstv %s741_s4 }
   0x2   :  { %11 = vst [vmem:[#allocation2] sm:$0x1] %v10_v0 }
   0x3   :  { %12 = vsyncpa [#allocation4], 0 }
   0x4   :  { %14 = vsyncpa [#allocation4 + $0x1], 0  ;;  %s626_s20 = smov 0   ;;  %s628_s21 = smov 0  }
   0x5   :  { %s630_s22 = smov 0   ;;  %s632_s23 = smov 0  }
   0x6 LB: > { %s647_s4 = sadd.s32 4294967295, %s588_s23   ;;  %s465_s24 = sadd.s32 4294967294, %s588_s23   ;;  %s588_s23 = sphi %s632_s23, %s748_s23   ;;  %s584_s22 = sphi %s630_s22, %s747_s22   ;;  %s580_s21 = sphi %s628_s21, %s746_s21   ;;  %s576_s20 = sphi %s626_s20, %s745_s20  }
   0x7   : > { %s651_s25 = sadd.s32 1, %s588_s23   ;;  %s137_s26 = sadd.s32 1, %s584_s22 }
   0x8   : > { %s134_s27 = ssub.s32 %s588_s23, %s651_s25  ;;  %p147_p0 = scmp.ne.s32.totalorder %s584_s22, %s580_s21 }
   0x9   : > { %p135_p1 = scmp.eq.s32.totalorder %s134_s27, 0  ;;  %p148_p2 = scmp.eq.s32.totalorder %s647_s4, 1 }
   0xa   : > { %p153_p3 = scmp.ne.s32.totalorder %s580_s21, %s576_s20  ;;  %p154_p4 = scmp.eq.s32.totalorder %s465_s24, 1 }
   0xb   : > { %s662_s28 = scalar_select %p135_p1, %s584_s22, %s137_s26  }
   0xc   : > { %p664_p5 = por %p148_p2, %p147_p0  ;;  %p668_p6 = por %p154_p4, %p153_p3 }
   0xd   : > { %p468_p7 = scmp.ge.s32.totalorder %s588_s23, 1  ;;  %p193_p8 = scmp.lt.s32.totalorder %s588_s23, 3 }
   0xf   : > { %p194_p9 = pnand %p468_p7, %p193_p8 }
  0x10   : > { %s470_s6 = sshll.u32 (!%p194_p9), %s647_s4, 1  ;;  %v590_v1 = vmov (!%p194_p9), 0   ;;  %v235_v2 = vld [vmem:[%s739_s2] sm:$0xff] (!%p194_p9)  ;;  %v236_v3 = vld [vmem:[%s739_s2 + $0x8] sm:$0xff] (!%p194_p9)  ;;  %vm256_vm0 = vcmask (!%p194_p9), 1043456   ;;  %vm252_vm1 = vcmask (!%p194_p9), 64512   ;;  %v319_v28 = vlaneseq (!%p194_p9) }
  0x11   : > { %197 = sbr.rel (%p194_p9) target bundleno = 494 (0x1ee), region = 40  ;;  %p222_p10 = scmp.lt.s32.totalorder (!%p194_p9), %s470_s6, 3  ;;  %295 = vmatprep.mubr.bf16.mxu0 (!%p194_p9), %v590_v1  ;;  %523 = vset.pattern.permute.xlu0 (!%p194_p9), %v590_v1  ;;  %v525_v9 = vld [vmem:[%s738_s1] sm:$0xff] (!%p194_p9)   ;;  %vm323_vm2 = vcmask (!%p194_p9), 130048   ;;  %v591_v32 = vmov (!%p194_p9), 1966171168  }
  0x12   : > { %239 = vperm.xlu0 (!%p194_p9), %523, %v235_v2   ;;  %359 = vmatprep.mubr.bf16.mxu1 (!%p194_p9), %v590_v1  ;;  %v313_v10 = vld [vmem:[#allocation2] sm:$0x1] (!%p194_p9)  ;;  %v320_v29 = vshrl.u32 (!%p194_p9), %v319_v28, 7  ;;  %v372_v33 = vunpack.c.l.s4 (!%p194_p9), %v591_v32  ;;  %s218_s19 = sand.u32 (!%p194_p9), 1, %s580_s21   ;;  %s481_s26 = sshll.u32 (!%p194_p9), %s647_s4, 5  ;;  %vm388_vm3 = vcmp.lt.s32.totalorder (!%p194_p9), %v319_v28, 256 }
  0x13   : > { %524 = vset.pattern.permute.xlu1 (!%p194_p9), %v590_v1  ;;  %v310_v27 = vld [vmem:[%s740_s3] sm:$0x1] (!%p194_p9)  ;;  %s469_s24 = sshll.u32 (!%p194_p9), %s218_s19, 1  ;;  %s695_s9 = scalar_lea.hbm (!%p194_p9), %s742_s5, %s481_s26 }
  0x14   : > { %316 = vperm.xlu1 (!%p194_p9), %524, %v313_v10   ;;  %v321_v30 = vsub.s32 (!%p194_p9), 0, %v320_v29  ;;  %v373_v35 = vunpack.c.0.s8 (!%p194_p9), %v372_v33  ;;  %s220_s27 = scalar_lea.vmem (!%p194_p9), [#allocation3], %s469_s24  ;;  %s392_s10 = scalar_lea.sflag (!%p194_p9), [#allocation4], %s218_s19 }
  0x15   : > { %s592_s4 = smov (!%p194_p9), [#allocation3]  }
  0x16   : > { %244 = vperm.xlu0 (!%p194_p9), %523, %v236_v3   ;;  %v376_v40 = vsub.s32 (!%p194_p9), %v373_v35, %v320_v29  ;;  %s530_s12 = sshll.u32 (!%p194_p9), %s592_s4, 4  ;;  %s531_s12 = int_to_ptr.vmem [resolvable:$false] %s530_s12 }
  0x17   : > { %s532_s13 = scalar_lea.vmem (!%p194_p9), %s531_s12, 64 }
  0x18   : > { %s750_s6 = smov (!%p222_p10, %s470_s6), 3 }
  0x19   : > { %s471_s11 = sshll.u32 %s750_s6, 3  ;;  %s406_s6 = sshll.u32 %s220_s27, 4  ;;  %s697_s6 = int_to_ptr.vmem [resolvable:$true] %s406_s6 }
  0x1a   : > { %s225_s14 = scalar_lea.vmem %s737_s0, %s471_s11  ;;  %s526_s11 = scalar_lea.vmem %s697_s6, 32 }
  0x1b   : > { %v230_v4 = vld [vmem:[%s225_s14 + $0x8] sm:$0xff]  ;;  %v229_v5 = vld [vmem:[%s225_s14] sm:$0xff]  ;;  %p527_p11 = scmp.ne.s32.totalorder %s697_s6, %s526_s11  ;;  %p533_p0 = scmp.lt.s32.totalorder %s697_s6, %s531_s12 }
  0x1c   : > { %v232_v6 = vpack.c.bf16 %v230_v4, %v230_v4  ;;  %v231_v7 = vpack.c.bf16 %v229_v5, %v229_v5  ;;  %p534_p1 = scmp.lt.s32.totalorder %s532_s13, %s526_s11 }
  0x1d   : > { %p528_p12 = pnand %p527_p11, %p664_p5 }
  0x1e   : > { %473 = vmatprep.subr.msk.bf16.mxu0 %vm256_vm0, %v232_v6  ;;  %v258_v8 = vsel %vm256_vm0, %v231_v7, 0  ;;  %p535_p2 = por %p534_p1, %p533_p0 }
  0x1f   : > { %264 = vmatpush1.bf16.msra.mxu0 %v258_v8  ;;  %p529_p13 = pneg %p528_p12 }
  0x21   : > { %p536_p3 = pnand %p535_p2, %p529_p13 }
  0x22   : > { %474 = vmatmul.mubr.msk.bf16.vlgmr.msra.gmra.mrb[0].mxu0 %vm252_vm1, %v525_v9 }
  0x91   : > { %v240_v11 = vpop.permute.xlu0 %239 }
  0x93   : > { %v317_v31 = vpop.permute.xlu1 %316 }
  0x94   : > { %v322_v34 = vrot.slane %v317_v31, %v321_v30 }
  0x95   : > { %v245_v15 = vpop.permute.xlu0 %244 }
  0xf5   : > { %v297_v12 = vpop.f32.mrb[0].mxu0 }
  0xf6   : > { %v298_v13 = vadd.f32 %v297_v12, %v240_v11  ;;  %v299_v14 = vpop.f32.mrb[1].mxu0 }
  0xf7   : > { %v300_v16 = vadd.f32 %v299_v14, %v240_v11  ;;  %v301_v17 = vpop.f32.mrb[2].mxu0 }
  0xf8   : > { %v302_v18 = vadd.f32 %v301_v17, %v245_v15  ;;  %v303_v19 = vpop.f32.mrb[3].mxu0  ;;  %v306_v21 = vmax.f32 %v298_v13, 0.0 }
  0xf9   : > { %v304_v20 = vadd.f32 %v303_v19, %v245_v15  ;;  %v307_v23 = vmax.f32 %v300_v16, 0.0 }
  0xfa   : > { %v308_v22 = vmax.f32 %v302_v18, 0.0 }
  0xfb   : > { %v309_v24 = vmax.f32 %v304_v20, 0.0 }
  0xfc   : > { %v311_v25 = vpack.c.bf16 %v308_v22, %v306_v21 }
  0xfd   : > { %v312_v26 = vpack.c.bf16 %v309_v24, %v307_v23 }
  0xff   : > { %327 = vmatprep.subr.bf16.mxu1 %v312_v26 }
 0x100   : > { %328 = vmatpush1.bf16.msra.mxu1 %v311_v25 }
 0x103   : > { %475 = vmatmul.mubr.msk.bf16.vlgmr.msra.gmra.mrb[0].mxu1 %vm323_vm2, %v310_v27 }
 0x1d6   : > { %v361_v36 = vpop.f32.mrb[0].mxu1 }
 0x1d7   : > { %v362_v37 = vadd.f32 %v361_v36, %v322_v34  ;;  %v363_v38 = vpop.f32.mrb[1].mxu1 }
 0x1d8   : > { %v364_v39 = vadd.f32 %v363_v38, %v322_v34  ;;  %v365_v41 = vpop.f32.mrb[2].mxu1 }
 0x1d9   : > { %v366_v42 = vpop.f32.mrb[3].mxu1 }
 0x1da   : > { %v370_v43 = vcombine.low %v362_v37, %v364_v39 }
 0x1dc   : > { %v377_v44 = vrot.slane %v370_v43, %v376_v40 }
 0x1de   : > { %v384_v45 = vrot.slane %v377_v44, %v376_v40 }
 0x1e0   : > { %390 = vst.msk [vmem:[%s220_s27] sm:$0x3] %vm388_vm3, %v384_v45 }
 0x1e1   : > { %539 = shalt.err (!%p536_p3)
}
 0x1e2   : > { %s540_s14 = scalar_lea.hbm %s695_s9, 32  ;;  %s544_s17 = scalar_lea.hbm %s742_s5, 64 }
 0x1e3   : > { %p541_p4 = scmp.ne.s32.totalorder %s695_s9, %s540_s14  ;;  %p545_p9 = scmp.lt.u32.totalorder %s695_s9, %s742_s5 }
 0x1e4   : > { %p546_p10 = scmp.lt.u32.totalorder %s544_s17, %s540_s14  ;;  %p548_p12 = scmp.lt.u32.totalorder %s540_s14, %s695_s9 }
 0x1e5   : > { %p542_p7 = pnand %p541_p4, %p664_p5 }
 0x1e6   : > { %p547_p11 = por %p546_p10, %p545_p9 }
 0x1e7   : > { %p543_p8 = pneg %p542_p7 }
 0x1e8   : > { %p549_p13 = por %p548_p12, %p547_p11 }
 0x1ea   : > { %p550_p0 = pnand %p549_p13, %p543_p8 }
 0x1ec   : > { %553 = shalt.err (!%p550_p0)
}
 0x1ed   : > { %482 = dma.vmem_to_hbm [thread:$0]  (%p664_p5), %s697_s6, 32, %s695_s9, %s392_s10  }
 0x1ee PF: > { %p488_p1 = scmp.ge.s32.totalorder %s588_s23, 2  ;;  %s418_s24 = sand.u32 1, %s576_s20  }
 0x1ef   : > { %s419_s26 = scalar_lea.sflag [#allocation4], %s418_s24 }
 0x1f0   : > { %p485_p2 = pnand %p488_p1, %p668_p6 }
 0x1f2   : > { %571 = dma.done.wait (!%p485_p2), %s419_s26, 32  }
 0x1f3   : > { %573 = vsyncadd (!%p485_p2), %s419_s26, 4294967264  ;;  %p17_p3 = scmp.ge.s32.totalorder %s651_s25, 4   ;;  %s745_s20 = smov %s580_s21 }
 0x1f4   : > { %s746_s21 = smov %s584_s22  ;;  %s747_s22 = smov %s662_s28 }
 0x1f5   : > { %s748_s23 = smov %s651_s25  ;;  %19 = sbr.rel (!%p17_p3) target bundleno = 6 (0x6), region = 75 }
 0x1fc   :  { %424 = vsyncpa [#allocation4], 1 }
 0x1fd   :  { %426 = vsyncpa [#allocation4 + $0x1], 1 }

</bundles_post_ra>
